<compile_context>
chip_gen: v7x
topology: tpu7x:2x2x1
jax: 0.10.0
libtpu: 0.0.40
codegen_flags: <defaults>
</compile_context>

<pallas_src>
import functools

import jax
import jax.numpy as jnp
from jax.experimental import pallas as pl
from jax.experimental.pallas import tpu as pltpu


# Per-step block budget in *f32-equivalent elements* (4 MiB of f32).  With the
# (8, W) accumulators, double-buffered input + a few full-block f32 compiler
# temporaries stay well below the 32 MiB scoped-VMEM limit set below on every
# generation (v5e/v6e: 128 MiB physical VMEM, v7x: 64 MiB per TensorCore).
_DEFAULT_BLOCK_ELEMS = 1 << 20
_VMEM_LIMIT_BYTES = 32 * 1024 * 1024


def _largest_divisor_leq(n, cap):
    cap = int(max(1, min(n, cap)))
    for b in range(cap, 0, -1):
        if n % b == 0:
            return b
    return 1


def _choose_row_block(h_pad, per_row_elems, budget_elems):
    """Largest tr with tr % 8 == 0, h_pad % tr == 0, tr*per_row_elems <= budget."""
    max_rows = max(8, (budget_elems // max(1, per_row_elems)) // 8 * 8)
    best = 8
    t = 8
    limit = min(h_pad, max_rows)
    while t <= limit:
        if h_pad % t == 0:
            best = t
        t += 8
    return best


def _tv_sums_kernel(x_ref, h_out_ref, w_out_ref, acc_h, acc_w, hcorr, carry):
    """Streaming partial sums of squared spatial diffs of the channel sum.

    x_ref        : (bn, G, tr, W) block -- `bn` images, `G` channels, `tr` rows.
    h_out/w_out  : (1, 1, 1) per image-group partial sums (written on last block).
    acc_h/acc_w  : (8, W) f32 folded element-wise accumulators.
    hcorr        : (bn, W) f32 accumulated per-image row-0 boundary corrections.
    carry        : (bn, W) f32 last row of the previous row-block, per image.
    """
    j = pl.program_id(1)
    nj = pl.num_programs(1)

    bn, _g, tr, w = x_ref.shape
    # Channel *sum*; the 1/G**2 of the channel mean is folded into the wrapper.
    xs = jnp.sum(x_ref[...].astype(jnp.float32), axis=1)            # (bn, tr, W)
    x0 = xs[:, 0, :]                                                 # (bn, W)
    xl = xs[:, tr - 1, :]                                            # (bn, W)

    @pl.when(j == 0)
    def _():
        acc_h[...] = jnp.zeros_like(acc_h)
        acc_w[...] = jnp.zeros_like(acc_w)
        hcorr[...] = jnp.zeros_like(hcorr)
        # Row 0 of an image has no predecessor: seed the carry with the row
        # itself so its boundary correction contributes exactly zero.
        carry[...] = x0

    # Fold the bn images onto the sublane axis: (bn*tr, W).  tr % 8 == 0, so
    # this is an aligned, copy-free view.
    xf = xs.reshape(bn * tr, w)

    # ---- W direction: wrapped diff, no per-step masking -------------------
    # Column 0 of dwf holds only spurious wrap terms (col 0 - col W-1); they
    # are excluded once in the epilogue via column 0 of acc_w.
    dwf = xf - pltpu.roll(xf, 1, 1)
    acc_w[...] += jnp.sum((dwf * dwf).reshape(-1, 8, w), axis=0)

    # ---- H direction: wrapped diff + tiny per-step boundary correction ----
    # Folded row p wraps to row p-1, so each image's row 0 picks up a spurious
    # neighbour (previous image's / same block's last row).  Correct on the
    # (bn, W) strip only: add the true boundary term, subtract the spurious one.
    dhf = xf - pltpu.roll(xf, 1, 0)
    acc_h[...] += jnp.sum((dhf * dhf).reshape(-1, 8, w), axis=0)

    d_spur = dhf.reshape(bn, tr, w)[:, 0, :]      # exactly the spurious diffs in the bulk
    d_true = x0 - carry[...]
    hcorr[...] += d_true * d_true - d_spur * d_spur
    carry[...] = xl                               # carry last rows into the next block

    @pl.when(j == nj - 1)
    def _():
        aw = acc_w[...]
        h_out_ref[...] = (jnp.sum(acc_h[...]) + jnp.sum(hcorr[...])).reshape(1, 1, 1)
        w_out_ref[...] = (jnp.sum(aw) - jnp.sum(aw[:, 0:1])).reshape(1, 1, 1)


@functools.partial(jax.jit, static_argnames=("block_elems",))
def _tv_sums(x4, block_elems=_DEFAULT_BLOCK_ELEMS):
    """Return (h_tv, w_tv) of the channel mean of x4.

    x4: (N, G, H, W).  TV is computed on mean(x4, axis=1); use G == 1 for the
    plain per-channel TV of x (N = B*C).
    """
    N, G, H, W = x4.shape
    itemsize = jnp.dtype(x4.dtype).itemsize

    # Pad H to a multiple of 8 with edge-replicated rows.  Replicated rows add
    # zero H-variation; their (known) spurious W-variation is subtracted below.
    pad = (-H) % 8
    spur_w = jnp.float32(0.0)
    if pad:
        last = jnp.sum(x4[:, :, H - 1, :].astype(jnp.float32), axis=1)   # (N, W)
        spur_w = pad * jnp.sum((last[:, 1:] - last[:, :-1]) ** 2)
        x4 = jnp.pad(x4, ((0, 0), (0, 0), (0, pad), (0, 0)), mode="edge")
    Hp = H + pad

    # Blocking: pack whole images per grid step when they fit the budget
    # (amortizes the per-step overhead for small images); otherwise stream one
    # image in row blocks with a per-image last-row carry.
    img_elems = G * Hp * W
    if img_elems <= block_elems:
        bn = _largest_divisor_leq(N, min(block_elems // img_elems, 2048))
        tr = Hp
    else:
        bn = 1
        tr = _choose_row_block(Hp, G * W, block_elems)
    nj = Hp // tr
    ng = N // bn

    h_part, w_part = pl.pallas_call(
        _tv_sums_kernel,
        out_shape=(
            jax.ShapeDtypeStruct((ng, 1, 1), jnp.float32),
            jax.ShapeDtypeStruct((ng, 1, 1), jnp.float32),
        ),
        grid_spec=pltpu.PrefetchScalarGridSpec(
            num_scalar_prefetch=0,
            grid=(ng, nj),
            in_specs=[pl.BlockSpec((bn, G, tr, W), lambda n, j: (n, 0, j, 0))],
            out_specs=[
                pl.BlockSpec((1, 1, 1), lambda n, j: (n, 0, 0)),
                pl.BlockSpec((1, 1, 1), lambda n, j: (n, 0, 0)),
            ],
            scratch_shapes=[
                pltpu.VMEM((8, W), jnp.float32),     # acc_h (folded)
                pltpu.VMEM((8, W), jnp.float32),     # acc_w (folded)
                pltpu.VMEM((bn, W), jnp.float32),    # hcorr: row-0 corrections
                pltpu.VMEM((bn, W), jnp.float32),    # carry: previous last rows
            ],
        ),
        compiler_params=pltpu.CompilerParams(
            dimension_semantics=("parallel", "arbitrary"),
            vmem_limit_bytes=_VMEM_LIMIT_BYTES,
        ),
        cost_estimate=pl.CostEstimate(
            flops=8 * N * G * Hp * W,
            transcendentals=0,
            bytes_accessed=N * G * Hp * W * itemsize + 8 * ng,
        ),
    )(x4)

    inv_g2 = jnp.float32(1.0 / (G * G))
    h_tv = jnp.sum(h_part) * inv_g2
    w_tv = (jnp.sum(w_part) - spur_w) * inv_g2
    return h_tv, w_tv


def tv_forward(x, clean_image=None):
    """JAX/Pallas equivalent of TV.forward.

    x:           (B, C, H, W)
    clean_image: optional (B, 3, H, W) reference image (the `clean_image`
                 entry of `_input[-1]` in the PyTorch module).
    """
    B, C, H, W = x.shape
    count_h = C * (H - 1) * W      # zero if H == 1 -> inf/nan, same as PyTorch
    count_w = C * H * (W - 1)      # zero if W == 1 -> inf/nan, same as PyTorch

    # TV of x: every (b, c) plane is an independent image (G = 1); the reshape
    # is metadata-only (contiguous).
    h_tv, w_tv = _tv_sums(x.reshape(B * C, 1, H, W))

    loss_weight = jnp.float32(1.0)
    if clean_image is not None:
        gamma = 5.0
        # Channel mean fused into the kernel (G = C_img, 1/G**2 in the wrapper).
        h_tv_img, w_tv_img = _tv_sums(clean_image)
        deriv_img = (jnp.abs(h_tv_img / count_h)
                     + jnp.abs(w_tv_img / count_w)) / B
        loss_weight = jnp.exp(-gamma * deriv_img) / 2.0

    return loss_weight * 2.0 * (h_tv / count_h + w_tv / count_w) / B


def _tv_forward_reference(x, clean_image=None):
    x = x.astype(jnp.float32)
    B, C, H, W = x.shape
    count_h = C * (H - 1) * W
    count_w = C * H * (W - 1)
    h_tv = jnp.sum((x[:, :, 1:, :] - x[:, :, :-1, :]) ** 2)
    w_tv = jnp.sum((x[:, :, :, 1:] - x[:, :, :, :-1]) ** 2)
    loss_weight = 1.0
    if clean_image is not None:
        g = jnp.mean(clean_image.astype(jnp.float32), axis=1)
        h_i = jnp.sum((g[:, 1:, :] - g[:, :-1, :]) ** 2)
        w_i = jnp.sum((g[:, :, 1:] - g[:, :, :-1]) ** 2)
        deriv = (jnp.abs(h_i / count_h) + jnp.abs(w_i / count_w)) / B
        loss_weight = jnp.exp(-5.0 * deriv) / 2.0
    return loss_weight * 2.0 * (h_tv / count_h + w_tv / count_w) / B


if __name__ == "__main__":
    key = jax.random.PRNGKey(0)
    k1, k2, k3, k4 = jax.random.split(key, 4)

    # Small shapes consistent with the module: batch=2, channels=4, spatial=16.
    x = jax.random.normal(k1, (2, 4, 16, 16), dtype=jnp.float32)
    out = jax.block_until_ready(tv_forward(x))
    ref = jax.block_until_ready(_tv_forward_reference(x))
    assert jnp.allclose(out, ref, rtol=1e-4, atol=1e-6), (out, ref)

    # clean_image-weighted branch (channel mean fused into the kernel, G = 3).
    img = jax.random.uniform(k2, (2, 3, 16, 16), dtype=jnp.float32)
    out_img = jax.block_until_ready(tv_forward(x, clean_image=img))
    ref_img = jax.block_until_ready(_tv_forward_reference(x, clean_image=img))
    assert jnp.allclose(out_img, ref_img, rtol=1e-4, atol=1e-6), (out_img, ref_img)

    # Multi-row-block streaming path (carry across row blocks): force tr = 8.
    xb = jax.random.normal(k3, (2, 1, 64, 128), dtype=jnp.float32)
    h_b, w_b = _tv_sums(xb, block_elems=8 * 128)
    h_ref_b = jnp.sum((xb[:, :, 1:, :] - xb[:, :, :-1, :]) ** 2)
    w_ref_b = jnp.sum((xb[:, :, :, 1:] - xb[:, :, :, :-1]) ** 2)
    jax.block_until_ready((h_b, w_b))
    assert jnp.allclose(h_b, h_ref_b, rtol=1e-4, atol=1e-3), (h_b, h_ref_b)
    assert jnp.allclose(w_b, w_ref_b, rtol=1e-4, atol=1e-3), (w_b, w_ref_b)

    # Multi-group image packing path (bn = 4 images per step, 2 grid groups).
    h_g, w_g = _tv_sums(x.reshape(8, 1, 16, 16), block_elems=1024)
    h_ref_g = jnp.sum((x[:, :, 1:, :] - x[:, :, :-1, :]) ** 2)
    w_ref_g = jnp.sum((x[:, :, :, 1:] - x[:, :, :, :-1]) ** 2)
    jax.block_until_ready((h_g, w_g))
    assert jnp.allclose(h_g, h_ref_g, rtol=1e-4, atol=1e-4), (h_g, h_ref_g)
    assert jnp.allclose(w_g, w_ref_g, rtol=1e-4, atol=1e-4), (w_g, w_ref_g)

    # H not divisible by 8: edge-pad + spurious-W subtraction path (G = 3).
    xo = jax.random.normal(k4, (2, 3, 13, 16), dtype=jnp.float32)
    out_o = jax.block_until_ready(tv_forward(jnp.ones((2, 4, 13, 16)) * 0 + xo[:, :1] * 0 + 1.0))  # warm path only
    h_o, w_o = _tv_sums(xo)
    go = jnp.mean(xo, axis=1)
    h_ref_o = jnp.sum((go[:, 1:, :] - go[:, :-1, :]) ** 2)
    w_ref_o = jnp.sum((go[:, :, 1:] - go[:, :, :-1]) ** 2)
    jax.block_until_ready((h_o, w_o))
    assert jnp.allclose(h_o, h_ref_o, rtol=1e-4, atol=1e-5), (h_o, h_ref_o)
    assert jnp.allclose(w_o, w_ref_o, rtol=1e-4, atol=1e-5), (w_o, w_ref_o)

    print("KERNEL_OK")
</pallas_src>

<mosaic_0001>
module attributes {stable_mosaic.version = 11 : i64} {
  func.func @_tv_sums_kernel(%arg0: i32, %arg1: i32, %arg2: memref<8x1x16x16xf32, #tpu.memory_space<vmem>>, %arg3: memref<1x1x1xf32, #tpu.memory_space<vmem>>, %arg4: memref<1x1x1xf32, #tpu.memory_space<vmem>>, %arg5: memref<8x16xf32, #tpu.memory_space<vmem>>, %arg6: memref<8x16xf32, #tpu.memory_space<vmem>>, %arg7: memref<8x16xf32, #tpu.memory_space<vmem>>, %arg8: memref<8x16xf32, #tpu.memory_space<vmem>>) attributes {dimension_semantics = [#tpu.dimension_semantics<parallel>, #tpu.dimension_semantics<arbitrary>], iteration_bounds = array<i64: 1, 1>, scalar_prefetch = 0 : i64, scratch_operands = 4 : i64, tpu.core_type = #tpu.core_type<tc>, window_params = [{transform_indices = @transform_0, window_bounds = array<i64: 8, 1, 16, 16>}, {transform_indices = @transform_1, window_bounds = array<i64: 1, 1, 1>}, {transform_indices = @transform_2, window_bounds = array<i64: 1, 1, 1>}]} {
    %c0 = arith.constant 0 : index
    %c0_0 = arith.constant 0 : index
    %c0_1 = arith.constant 0 : index
    %c0_2 = arith.constant 0 : index
    %0 = vector.load %arg2[%c0, %c0_0, %c0_1, %c0_2] : memref<8x1x16x16xf32, #tpu.memory_space<vmem>>, vector<8x1x16x16xf32>
    %cst = arith.constant dense<0.000000e+00> : vector<8x16x16xf32>
    %1 = vector.multi_reduction <add>, %0, %cst [1] : vector<8x1x16x16xf32> to vector<8x16x16xf32>
    %2 = vector.extract_strided_slice %1 {offsets = [0, 0, 0], sizes = [8, 1, 16], strides = [1, 1, 1]} : vector<8x16x16xf32> to vector<8x1x16xf32>
    %3 = vector.shape_cast %2 : vector<8x1x16xf32> to vector<8x16xf32>
    %4 = vector.extract_strided_slice %1 {offsets = [0, 15, 0], sizes = [8, 1, 16], strides = [1, 1, 1]} : vector<8x16x16xf32> to vector<8x1x16xf32>
    %5 = vector.shape_cast %4 : vector<8x1x16xf32> to vector<8x16xf32>
    %c0_i32 = arith.constant 0 : i32
    %6 = arith.cmpi eq, %arg1, %c0_i32 : i32
    %7 = arith.extui %6 : i1 to i32
    %c0_i32_3 = arith.constant 0 : i32
    %8 = arith.cmpi ne, %7, %c0_i32_3 : i32
    scf.if %8 {
      %cst_25 = arith.constant 0.000000e+00 : f32
      %41 = vector.broadcast %cst_25 : f32 to vector<8x16xf32>
      %c0_26 = arith.constant 0 : index
      %c0_27 = arith.constant 0 : index
      %42 = vector.load %arg5[%c0_26, %c0_27] : memref<8x16xf32, #tpu.memory_space<vmem>>, vector<8x16xf32>
      tpu.vector_store %arg5[%c0_26, %c0_27], %41 {strides = array<i32>} : memref<8x16xf32, #tpu.memory_space<vmem>>, vector<8x16xf32>,
      %cst_28 = arith.constant 0.000000e+00 : f32
      %43 = vector.broadcast %cst_28 : f32 to vector<8x16xf32>
      %c0_29 = arith.constant 0 : index
      %c0_30 = arith.constant 0 : index
      %44 = vector.load %arg6[%c0_29, %c0_30] : memref<8x16xf32, #tpu.memory_space<vmem>>, vector<8x16xf32>
      tpu.vector_store %arg6[%c0_29, %c0_30], %43 {strides = array<i32>} : memref<8x16xf32, #tpu.memory_space<vmem>>, vector<8x16xf32>,
      %cst_31 = arith.constant 0.000000e+00 : f32
      %45 = vector.broadcast %cst_31 : f32 to vector<8x16xf32>
      %c0_32 = arith.constant 0 : index
      %c0_33 = arith.constant 0 : index
      %46 = vector.load %arg7[%c0_32, %c0_33] : memref<8x16xf32, #tpu.memory_space<vmem>>, vector<8x16xf32>
      tpu.vector_store %arg7[%c0_32, %c0_33], %45 {strides = array<i32>} : memref<8x16xf32, #tpu.memory_space<vmem>>, vector<8x16xf32>,
      %c0_34 = arith.constant 0 : index
      %c0_35 = arith.constant 0 : index
      %47 = vector.load %arg8[%c0_34, %c0_35] : memref<8x16xf32, #tpu.memory_space<vmem>>, vector<8x16xf32>
      tpu.vector_store %arg8[%c0_34, %c0_35], %3 {strides = array<i32>} : memref<8x16xf32, #tpu.memory_space<vmem>>, vector<8x16xf32>,
    } else {
    }
    %9 = vector.shape_cast %1 : vector<8x16x16xf32> to vector<128x16xf32>
    %c1_i32 = arith.constant 1 : i32
    %10 = tpu.dynamic_rotate %9 by %c1_i32 dim 1 : vector<128x16xf32>, i32 -> vector<128x16xf32>
    %11 = arith.subf %9, %10 : vector<128x16xf32>
    %c0_4 = arith.constant 0 : index
    %c0_5 = arith.constant 0 : index
    %12 = vector.load %arg6[%c0_4, %c0_5] : memref<8x16xf32, #tpu.memory_space<vmem>>, vector<8x16xf32>
    %13 = arith.mulf %11, %11 : vector<128x16xf32>
    %14 = vector.shape_cast %13 : vector<128x16xf32> to vector<16x8x16xf32>
    %cst_6 = arith.constant dense<0.000000e+00> : vector<8x16xf32>
    %15 = vector.multi_reduction <add>, %14, %cst_6 [0] : vector<16x8x16xf32> to vector<8x16xf32>
    %16 = arith.addf %12, %15 : vector<8x16xf32>
    %c0_7 = arith.constant 0 : index
    %c0_8 = arith.constant 0 : index
    %17 = vector.load %arg6[%c0_7, %c0_8] : memref<8x16xf32, #tpu.memory_space<vmem>>, vector<8x16xf32>
    tpu.vector_store %arg6[%c0_7, %c0_8], %16 {strides = array<i32>} : memref<8x16xf32, #tpu.memory_space<vmem>>, vector<8x16xf32>,
    %c1_i32_9 = arith.constant 1 : i32
    %18 = tpu.dynamic_rotate %9 by %c1_i32_9 dim 0 : vector<128x16xf32>, i32 -> vector<128x16xf32>
    %19 = arith.subf %9, %18 : vector<128x16xf32>
    %c0_10 = arith.constant 0 : index
    %c0_11 = arith.constant 0 : index
    %20 = vector.load %arg5[%c0_10, %c0_11] : memref<8x16xf32, #tpu.memory_space<vmem>>, vector<8x16xf32>
    %21 = arith.mulf %19, %19 : vector<128x16xf32>
    %22 = vector.shape_cast %21 : vector<128x16xf32> to vector<16x8x16xf32>
    %cst_12 = arith.constant dense<0.000000e+00> : vector<8x16xf32>
    %23 = vector.multi_reduction <add>, %22, %cst_12 [0] : vector<16x8x16xf32> to vector<8x16xf32>
    %24 = arith.addf %20, %23 : vector<8x16xf32>
    %c0_13 = arith.constant 0 : index
    %c0_14 = arith.constant 0 : index
    %25 = vector.load %arg5[%c0_13, %c0_14] : memref<8x16xf32, #tpu.memory_space<vmem>>, vector<8x16xf32>
    tpu.vector_store %arg5[%c0_13, %c0_14], %24 {strides = array<i32>} : memref<8x16xf32, #tpu.memory_space<vmem>>, vector<8x16xf32>,
    %26 = vector.shape_cast %19 : vector<128x16xf32> to vector<8x16x16xf32>
    %27 = vector.extract_strided_slice %26 {offsets = [0, 0, 0], sizes = [8, 1, 16], strides = [1, 1, 1]} : vector<8x16x16xf32> to vector<8x1x16xf32>
    %28 = vector.shape_cast %27 : vector<8x1x16xf32> to vector<8x16xf32>
    %c0_15 = arith.constant 0 : index
    %c0_16 = arith.constant 0 : index
    %29 = vector.load %arg8[%c0_15, %c0_16] : memref<8x16xf32, #tpu.memory_space<vmem>>, vector<8x16xf32>
    %30 = arith.subf %3, %29 : vector<8x16xf32>
    %c0_17 = arith.constant 0 : index
    %c0_18 = arith.constant 0 : index
    %31 = vector.load %arg7[%c0_17, %c0_18] : memref<8x16xf32, #tpu.memory_space<vmem>>, vector<8x16xf32>
    %32 = arith.mulf %30, %30 : vector<8x16xf32>
    %33 = arith.mulf %28, %28 : vector<8x16xf32>
    %34 = arith.subf %32, %33 : vector<8x16xf32>
    %35 = arith.addf %31, %34 : vector<8x16xf32>
    %c0_19 = arith.constant 0 : index
    %c0_20 = arith.constant 0 : index
    %36 = vector.load %arg7[%c0_19, %c0_20] : memref<8x16xf32, #tpu.memory_space<vmem>>, vector<8x16xf32>
    tpu.vector_store %arg7[%c0_19, %c0_20], %35 {strides = array<i32>} : memref<8x16xf32, #tpu.memory_space<vmem>>, vector<8x16xf32>,
    %c0_21 = arith.constant 0 : index
    %c0_22 = arith.constant 0 : index
    %37 = vector.load %arg8[%c0_21, %c0_22] : memref<8x16xf32, #tpu.memory_space<vmem>>, vector<8x16xf32>
    tpu.vector_store %arg8[%c0_21, %c0_22], %5 {strides = array<i32>} : memref<8x16xf32, #tpu.memory_space<vmem>>, vector<8x16xf32>,
    %c0_i32_23 = arith.constant 0 : i32
    %38 = arith.cmpi eq, %arg1, %c0_i32_23 : i32
    %39 = arith.extui %38 : i1 to i32
    %c0_i32_24 = arith.constant 0 : i32
    %40 = arith.cmpi ne, %39, %c0_i32_24 : i32
    scf.if %40 {
      %c0_25 = arith.constant 0 : index
      %c0_26 = arith.constant 0 : index
      %41 = vector.load %arg6[%c0_25, %c0_26] : memref<8x16xf32, #tpu.memory_space<vmem>>, vector<8x16xf32>
      %c0_27 = arith.constant 0 : index
      %c0_28 = arith.constant 0 : index
      %42 = vector.load %arg5[%c0_27, %c0_28] : memref<8x16xf32, #tpu.memory_space<vmem>>, vector<8x16xf32>
      %43 = vector.shape_cast %42 : vector<8x16xf32> to vector<1x8x16xf32>
      %cst_29 = arith.constant dense<0.000000e+00> : vector<1xf32>
      %44 = vector.multi_reduction <add>, %43, %cst_29 [1, 2] : vector<1x8x16xf32> to vector<1xf32>
      %45 = vector.shape_cast %44 : vector<1xf32> to vector<1x1x1xf32>
      %46 = vector.extract %45[0, 0, 0] : f32 from vector<1x1x1xf32>
      %c0_30 = arith.constant 0 : index
      %c0_31 = arith.constant 0 : index
      %47 = vector.load %arg7[%c0_30, %c0_31] : memref<8x16xf32, #tpu.memory_space<vmem>>, vector<8x16xf32>
      %48 = vector.shape_cast %47 : vector<8x16xf32> to vector<1x8x16xf32>
      %cst_32 = arith.constant dense<0.000000e+00> : vector<1xf32>
      %49 = vector.multi_reduction <add>, %48, %cst_32 [1, 2] : vector<1x8x16xf32> to vector<1xf32>
      %50 = vector.shape_cast %49 : vector<1xf32> to vector<1x1x1xf32>
      %51 = vector.extract %50[0, 0, 0] : f32 from vector<1x1x1xf32>
      %52 = arith.addf %46, %51 : f32
      %53 = vector.broadcast %52 : f32 to vector<1x1x1xf32>
      %c0_33 = arith.constant 0 : index
      %c0_34 = arith.constant 0 : index
      %c0_35 = arith.constant 0 : index
      %54 = vector.load %arg3[%c0_33, %c0_34, %c0_35] : memref<1x1x1xf32, #tpu.memory_space<vmem>>, vector<1x1x1xf32>
      tpu.vector_store %arg3[%c0_33, %c0_34, %c0_35], %53 {strides = array<i32>} : memref<1x1x1xf32, #tpu.memory_space<vmem>>, vector<1x1x1xf32>,
      %55 = vector.shape_cast %41 : vector<8x16xf32> to vector<1x8x16xf32>
      %cst_36 = arith.constant dense<0.000000e+00> : vector<1xf32>
      %56 = vector.multi_reduction <add>, %55, %cst_36 [1, 2] : vector<1x8x16xf32> to vector<1xf32>
      %57 = vector.shape_cast %56 : vector<1xf32> to vector<1x1x1xf32>
      %58 = vector.extract %57[0, 0, 0] : f32 from vector<1x1x1xf32>
      %59 = vector.extract_strided_slice %41 {offsets = [0, 0], sizes = [8, 1], strides = [1, 1]} : vector<8x16xf32> to vector<8x1xf32>
      %60 = vector.shape_cast %59 : vector<8x1xf32> to vector<1x8x1xf32>
      %cst_37 = arith.constant dense<0.000000e+00> : vector<1xf32>
      %61 = vector.multi_reduction <add>, %60, %cst_37 [1, 2] : vector<1x8x1xf32> to vector<1xf32>
      %62 = vector.shape_cast %61 : vector<1xf32> to vector<1x1x1xf32>
      %63 = vector.extract %62[0, 0, 0] : f32 from vector<1x1x1xf32>
      %64 = arith.subf %58, %63 : f32
      %65 = vector.broadcast %64 : f32 to vector<1x1x1xf32>
      %c0_38 = arith.constant 0 : index
      %c0_39 = arith.constant 0 : index
      %c0_40 = arith.constant 0 : index
      %66 = vector.load %arg4[%c0_38, %c0_39, %c0_40] : memref<1x1x1xf32, #tpu.memory_space<vmem>>, vector<1x1x1xf32>
      tpu.vector_store %arg4[%c0_38, %c0_39, %c0_40], %65 {strides = array<i32>} : memref<1x1x1xf32, #tpu.memory_space<vmem>>, vector<1x1x1xf32>,
    } else {
    }
    return
  }
  func.func @transform_0(%arg0: i32, %arg1: i32) -> (i32, i32, i32, i32) {
    %c0_i32 = arith.constant 0 : i32
    %c0_i32_0 = arith.constant 0 : i32
    %c0_i32_1 = arith.constant 0 : i32
    return %arg0, %c0_i32, %arg1, %c0_i32_0 : i32, i32, i32, i32
  }
  func.func @transform_1(%arg0: i32, %arg1: i32) -> (i32, i32, i32) {
    %c0_i32 = arith.constant 0 : i32
    %c0_i32_0 = arith.constant 0 : i32
    %c0_i32_1 = arith.constant 0 : i32
    return %arg0, %c0_i32, %c0_i32_0 : i32, i32, i32
  }
  func.func @transform_2(%arg0: i32, %arg1: i32) -> (i32, i32, i32) {
    %c0_i32 = arith.constant 0 : i32
    %c0_i32_0 = arith.constant 0 : i32
    %c0_i32_1 = arith.constant 0 : i32
    return %arg0, %c0_i32, %c0_i32_0 : i32, i32, i32
  }
}

</mosaic_0001>

<bundles_post_ra>
// kernel: _tv_sums.1
= control target key start
LH: loop header
LB: loop body
LE: loop exit
PB: predicated region body
PF: predicated region fallthrough
CT: control target
= control target key end

     0   :  { %8 = vsyncpa [#allocation7], 0  ;;  %s1144_s0 = inlined_call_operand.hbm [shape: f32[8,1,16,16], index: 0, kind: input, shape index: {}]   ;;  %s1145_s1 = inlined_call_operand.hbm [shape: f32[1,1,1], index: 1, kind: output, shape index: {0}]   ;;  %s1146_s2 = inlined_call_operand.hbm [shape: f32[1,1,1], index: 2, kind: output, shape index: {1}]  }
   0x1   :  { %9 = vsyncpa [#allocation8], 0 }
   0x2   :  { %10 = vsyncpa [#allocation11], 0  ;;  %s698_s9 = smov [#allocation6]   ;;  %s626_s13 = scalar_lea.hbm %s1144_s0, 2048 }
   0x3   :  { %s16_s10 = sshll.u32 %s698_s9, 4  ;;  %p627_p0 = scmp.ne.s32.totalorder %s1144_s0, %s626_s13  ;;  %s17_s10 = int_to_ptr.vmem [resolvable:$true] %s16_s10 }
   0x4   :  { %p630_p1 = scmp.lt.u32.totalorder %s626_s13, %s1144_s0 }
   0x6   :  { %p632_p2 = pnand %p630_p1, %p627_p0 }
   0x8   :  { %635 = shalt.err (!%p632_p2)
}
   0x9   :  { %s636_s18 = scalar_lea.vmem %s17_s10, 2048  ;;  %p641_p4 = scmp.lt.s32.totalorder %s17_s10, %s17_s10 }
   0xa   :  { %p637_p3 = scmp.ne.s32.totalorder %s17_s10, %s636_s18  ;;  %p642_p5 = scmp.lt.s32.totalorder %s636_s18, %s636_s18 }
   0xc   :  { %p643_p6 = por %p642_p5, %p641_p4 }
   0xe   :  { %p644_p7 = pnand %p643_p6, %p637_p3 }
  0x10   :  { %647 = shalt.err (!%p644_p7)
}
  0x11   :  { %s699_s19 = smov 128   ;;  %s700_s20 = smov 8  }
  0x12   :  { %22 = dma.hbm_to_vmem [thread:$0]  %s1144_s0, 2048, %s17_s10, [#allocation7], %s699_s19, %s699_s19, %s700_s20  }
  0x13   :  { %692 = dma.done.wait [#allocation7], 2048  }
  0x14   :  { %693 = vsyncadd [#allocation7], 4294965248  ;;  %v341_v0 = vlaneseq  ;;  %v735_v2 = vld [vmem:[#allocation6] sm:$0xff]  ;;  %v737_v3 = vld [vmem:[#allocation6 + $0x10] sm:$0xff]  ;;  %s701_s23 = smov 16   ;;  %vm75_vm1 = vcmask 1041409  }
  0x15   :  { %98 = vrot.lane.b32.xlu0 %v735_v2, %s701_s23  ;;  %104 = vrot.lane.b32.xlu1 %v737_v3, %s701_s23  ;;  %v743_v4 = vld [vmem:[#allocation6 + $0x18] sm:$0xff]  ;;  %v745_v5 = vld [vmem:[#allocation6 + $0x8] sm:$0xff]  ;;  %v74_v7 = vrot.slane %v737_v3, 7  ;;  %v759_v9 = vld [vmem:[#allocation6 + $0x20] sm:$0xff]  ;;  %vm78_vm2 = vcmask 1042434   ;;  %vm81_vm3 = vcmask 1043459  }
  0x16   :  { %v733_v1 = vshrl.u32 %v341_v0, 7  ;;  %v748_v6 = vrot.slane %v743_v4, 7  ;;  %v77_v10 = vrot.slane %v759_v9, 6  ;;  %v762_v11 = vld [vmem:[#allocation6 + $0x28] sm:$0xff]  ;;  %v766_v13 = vld [vmem:[#allocation6 + $0x30] sm:$0xff]  ;;  %v775_v17 = vld [vmem:[#allocation6 + $0x38] sm:$0xff] }
  0x17   :  { %v76_v12 = vsel %vm75_vm1, %v74_v7, %v735_v2  ;;  %v80_v14 = vrot.slane %v766_v13, 5  ;;  %v509_v16 = vrot.slane %v762_v11, 6  ;;  %v777_v18 = vld [vmem:[#allocation6 + $0x40] sm:$0xff]  ;;  %vm84_vm4 = vcmask 1044484   ;;  %v790_v25 = vld [vmem:[#allocation6 + $0x48] sm:$0xff]  ;;  %v792_v26 = vld [vmem:[#allocation6 + $0x50] sm:$0xff] }
  0x18   :  { %vm343_vm0 = vcmp.lt.s32.totalorder %v733_v1, 1  ;;  %v79_v15 = vsel %vm78_vm2, %v77_v10, %v76_v12  ;;  %v83_v19 = vrot.slane %v777_v18, 4  ;;  %v326_v20 = vrot.slane %v745_v5, 7  ;;  %v797_v30 = vld [vmem:[#allocation6 + $0x60] sm:$0xff]  ;;  %v807_v34 = vld [vmem:[#allocation6 + $0x58] sm:$0xff]  ;;  %v817_v42 = vld [vmem:[#allocation6 + $0x70] sm:$0xff] }
  0x19   :  { %v356_v8 = vsel %vm343_vm0, %v74_v7, %v748_v6  ;;  %101 = vrot.lane.b32.xlu0 %v745_v5, %s701_s23  ;;  %107 = vrot.lane.b32.xlu1 %v743_v4, %s701_s23  ;;  %v325_v21 = vrot.slane %v735_v2, 7  ;;  %v511_v22 = vrot.slane %v775_v17, 5  ;;  %v82_v23 = vsel %vm81_vm3, %v80_v14, %v79_v15  ;;  %v823_v43 = vld [vmem:[#allocation6 + $0x68] sm:$0xff]  ;;  %v826_v45 = vld [vmem:[#allocation6 + $0x78] sm:$0xff]  ;;  %s702_s0 = smov 113   ;;  %s704_s25 = smov [#allocation9]  }
  0x1a   :  { %v510_v24 = vsel %vm75_vm1, %v509_v16, %v748_v6  ;;  %v86_v27 = vrot.slane %v792_v26, 3  ;;  %v513_v28 = vrot.slane %v790_v25, 4  ;;  %v85_v29 = vsel %vm84_vm4, %v83_v19, %v82_v23  ;;  %s587_s26 = sshll.u32 %s704_s25, 4  ;;  %s588_s26 = int_to_ptr.vmem [resolvable:$true] %s587_s26 }
  0x1b   :  { %vm87_vm5 = vcmask 1045509   ;;  %v358_v31 = vsel %vm343_vm0, %v325_v21, %v326_v20  ;;  %v512_v32 = vsel %vm78_vm2, %v511_v22, %v510_v24  ;;  %v89_v33 = vrot.slane %v797_v30, 2  ;;  %s648_s29 = scalar_lea.vmem %s588_s26, 16  ;;  %s652_s30 = scalar_lea.vmem %s588_s26, 32 }
  0x1c   :  { %vm90_vm6 = vcmask 1046534   ;;  %v357_v35 = vsel %vm343_vm0, %v326_v20, %v74_v7  ;;  %v329_v36 = vrot.slane %v759_v9, 7  ;;  %v515_v37 = vrot.slane %v807_v34, 3  ;;  %p649_p8 = scmp.ne.s32.totalorder %s588_s26, %s648_s29  ;;  %p653_p9 = scmp.lt.s32.totalorder %s588_s26, %s588_s26 }
  0x1d   :  { %110 = vrot.lane.b32.xlu0 %v759_v9, %s701_s23  ;;  %113 = vrot.lane.b32.xlu1 %v762_v11, %s701_s23  ;;  %v88_v38 = vsel %vm87_vm5, %v86_v27, %v85_v29  ;;  %v361_v39 = vsub.f32 %v745_v5, %v358_v31  ;;  %v514_v40 = vsel %vm81_vm3, %v513_v28, %v512_v32  ;;  %vm93_vm7 = vcmask 1047559   ;;  %p654_p10 = scmp.lt.s32.totalorder %s652_s30, %s648_s29 }
  0x1e   :  { %v91_v41 = vsel %vm90_vm6, %v89_v33, %v88_v38  ;;  %v92_v44 = vrot.slane %v817_v42, 1  ;;  %v362_v46 = vsub.f32 %v737_v3, %v357_v35  ;;  %v517_v47 = vrot.slane %v823_v43, 2 }
  0x1f   :  { %v340_v48 = vrot.slane %v826_v45, 7  ;;  %vm62_vm8 = vcmask 130048   ;;  %v355_v49 = vsel %vm343_vm0, %v748_v6, %v329_v36  ;;  %v516_v50 = vsel %vm84_vm4, %v515_v37, %v514_v40  ;;  %p655_p11 = por %p654_p10, %p653_p9 }
  0x20   :  { %v94_v51 = vsel %vm93_vm7, %v92_v44, %v91_v41  ;;  %v378_v52 = vmul.f32 %v361_v39, %v361_v39  ;;  %v363_v53 = vsub.f32 %v743_v4, %v356_v8  ;;  %v519_v54 = vrot.slane %v826_v45, 1 }
  0x21   :  { %116 = vrot.lane.b32.xlu0 %v766_v13, %s701_s23  ;;  %119 = vrot.lane.b32.xlu1 %v775_v17, %s701_s23  ;;  %96 = vst.msk [vmem:[#allocation5] sm:$0xff] %vm62_vm8, %v94_v51  ;;  %v359_v55 = vsel %vm343_vm0, %v340_v48, %v325_v21  ;;  %v849_v56 = vmul.f32 %v362_v46, %v362_v46  ;;  %vm523_vm9 = vcmask 130055   ;;  %vm525_vm10 = vcmask 129024   ;;  %p656_p12 = pnand %p655_p11, %p649_p8 }
  0x22   :  { %v364_v57 = vsub.f32 %v759_v9, %v355_v49  ;;  %v518_v58 = vsel %vm87_vm5, %v517_v47, %v516_v50  ;;  %v360_v59 = vsub.f32 %v735_v2, %v359_v55  ;;  %v394_v60 = vsel %vm62_vm8, %v378_v52, 0.0 }
  0x23   :  { %v380_v61 = vmul.f32 %v363_v53, %v363_v53  ;;  %v520_v63 = vsel %vm90_vm6, %v519_v54, %v518_v58  ;;  %v396_v0 = vsel %vm62_vm8, %v849_v56, 0.0  ;;  %vm97_vm11 = vcmask 1047680  }
  0x24   :  { %v855_v62 = vmul.f32 %v360_v59, %v360_v59  ;;  %v864_v6 = vmul.f32 %v364_v57, %v364_v57  ;;  %vm567_vm12 = vcmask 7168   ;;  %vm555_vm13 = vcmask 0  }
  0x25   :  { %122 = vrot.lane.b32.xlu0 %v777_v18, %s701_s23  ;;  %125 = vrot.lane.b32.xlu1 %v790_v25, %s701_s23  ;;  %v398_v12 = vsel %vm62_vm8, %v380_v61, 0.0 }
  0x26   :  { %v393_v7 = vsel %vm62_vm8, %v855_v62, 0.0  ;;  %v400_v15 = vsel %vm62_vm8, %v864_v6, 0.0 }
  0x27   :  { %v395_v10 = vadd.f32 %v394_v60, %v393_v7  ;;  %v331_v7 = vrot.slane %v766_v13, 7 }
  0x28   :  { %v868_v8 = vld [vmem:[#allocation5] sm:$0xff] }
  0x29   :  { %128 = vrot.lane.b32.xlu0 %v792_v26, %s701_s23  ;;  %131 = vrot.lane.b32.xlu1 %v807_v34, %s701_s23  ;;  %524 = vst.msk [vmem:[#allocation5 - $0x7] sm:$0x80] %vm523_vm9, %v745_v5  ;;  %v397_v14 = vadd.f32 %v396_v0, %v395_v10 }
  0x2a   :  { %526 = vst.msk [vmem:[#allocation5 + $0x1] sm:$0x7f] %vm525_vm10, %v520_v63  ;;  %v330_v63 = vrot.slane %v762_v11, 7 }
  0x2b   :  { %v399_v16 = vadd.f32 %v398_v12, %v397_v14  ;;  %v332_v14 = vrot.slane %v775_v17, 7 }
  0x2c   :  { %v354_v0 = vsel %vm343_vm0, %v329_v36, %v330_v63  ;;  %v353_v12 = vsel %vm343_vm0, %v330_v63, %v331_v7 }
  0x2d   :  { %134 = vrot.lane.b32.xlu0 %v797_v30, %s701_s23  ;;  %137 = vrot.lane.b32.xlu1 %v823_v43, %s701_s23  ;;  %v874_v19 = vadd.f32 %v400_v15, %v399_v16  ;;  %v365_v10 = vsub.f32 %v762_v11, %v354_v0  ;;  %v366_v16 = vsub.f32 %v766_v13, %v353_v12 }
  0x2f   :  { %v382_v15 = vmul.f32 %v365_v10, %v365_v10  ;;  %v939_v36 = vmul.f32 %v366_v16, %v366_v16 }
  0x31   :  { %140 = vrot.lane.b32.xlu0 %v817_v42, %s701_s23  ;;  %143 = vrot.lane.b32.xlu1 %v826_v45, %s701_s23 }
  0x87   :  { %v99_v20 = vpop.permute.xlu0 %98  ;;  %v105_v21 = vpop.permute.xlu1 %104 }
  0x88   :  { %v100_v22 = vsel %vm97_vm11, %v99_v20, %v735_v2  ;;  %v106_v23 = vsel %vm97_vm11, %v105_v21, %v737_v3  ;;  %v352_v20 = vsel %vm343_vm0, %v331_v7, %v332_v14  ;;  %v333_v21 = vrot.slane %v777_v18, 7 }
  0x89   :  { %146 = vrot.lane.b32.xlu0 %v100_v22, %s701_s23  ;;  %v402_v22 = vsel %vm62_vm8, %v382_v15, 0.0  ;;  %v339_v7 = vrot.slane %v817_v42, 7 }
  0x8b   :  { %v102_v24 = vpop.permute.xlu0 %101  ;;  %v108_v27 = vpop.permute.xlu1 %107 }
  0x8c   :  { %v103_v28 = vsel %vm97_vm11, %v102_v24, %v745_v5  ;;  %v109_v29 = vsel %vm97_vm11, %v108_v27, %v743_v4  ;;  %v351_v24 = vsel %vm343_vm0, %v332_v14, %v333_v21  ;;  %v334_v27 = vrot.slane %v790_v25, 7 }
  0x8d   :  { %150 = vrot.lane.b32.xlu0 %v106_v23, %s701_s23  ;;  %148 = vrot.lane.b32.xlu1 %v103_v28, %s701_s23  ;;  %v367_v23 = vsub.f32 %v775_v17, %v352_v20  ;;  %v403_v28 = vadd.f32 %v402_v22, %v874_v19  ;;  %v434_v20 = vrot.slane %v868_v8, 7 }
  0x8f   :  { %v111_v31 = vpop.permute.xlu0 %110  ;;  %v114_v32 = vpop.permute.xlu1 %113 }
  0x90   :  { %v112_v33 = vsel %vm97_vm11, %v111_v31, %v759_v9  ;;  %v115_v35 = vsel %vm97_vm11, %v114_v32, %v762_v11  ;;  %v384_v31 = vmul.f32 %v367_v23, %v367_v23  ;;  %v368_v32 = vsub.f32 %v777_v18, %v351_v24 }
  0x91   :  { %152 = vrot.lane.b32.xlu1 %v109_v29, %s701_s23  ;;  %154 = vrot.lane.b32.xlu0 %v112_v33, %s701_s23  ;;  %v404_v29 = vsel %vm62_vm8, %v939_v36, 0.0  ;;  %v350_v33 = vsel %vm343_vm0, %v333_v21, %v334_v27  ;;  %v344_v21 = vsel %vm343_vm0, %v339_v7, %v340_v48 }
  0x93   :  { %v117_v37 = vpop.permute.xlu0 %116  ;;  %v120_v38 = vpop.permute.xlu1 %119 }
  0x94   :  { %v118_v39 = vsel %vm97_vm11, %v117_v37, %v766_v13  ;;  %v121_v40 = vsel %vm97_vm11, %v120_v38, %v775_v17  ;;  %v405_v37 = vadd.f32 %v404_v29, %v403_v28  ;;  %v406_v38 = vsel %vm62_vm8, %v384_v31, 0.0 }
  0x95   :  { %156 = vrot.lane.b32.xlu1 %v115_v35, %s701_s23  ;;  %158 = vrot.lane.b32.xlu0 %v118_v39, %s701_s23  ;;  %v335_v35 = vrot.slane %v792_v26, 7  ;;  %v953_v39 = vmul.f32 %v368_v32, %v368_v32  ;;  %v443_v28 = vsub.f32 %v735_v2, %v868_v8  ;;  %v375_v29 = vsub.f32 %v826_v45, %v344_v21 }
  0x96   :  { %v450_v31 = vsub.f32 %v817_v42, %v434_v20 }
  0x97   :  { %v123_v41 = vpop.permute.xlu0 %122  ;;  %v126_v44 = vpop.permute.xlu1 %125  ;;  %v349_v19 = vsel %vm343_vm0, %v334_v27, %v335_v35  ;;  %v452_v1 = vmul.f32 %v443_v28, %v443_v28 }
  0x98   :  { %v124_v46 = vsel %vm97_vm11, %v123_v41, %v777_v18  ;;  %v127_v47 = vsel %vm97_vm11, %v126_v44, %v790_v25  ;;  %v336_v41 = vrot.slane %v807_v34, 7  ;;  %v407_v44 = vadd.f32 %v406_v38, %v405_v37 }
  0x99   :  { %160 = vrot.lane.b32.xlu1 %v121_v40, %s701_s23  ;;  %162 = vrot.lane.b32.xlu0 %v124_v46, %s701_s23  ;;  %v369_v40 = vsub.f32 %v790_v25, %v350_v33  ;;  %v408_v46 = vsel %vm62_vm8, %v953_v39, 0.0  ;;  %v428_v38 = vrot.slane %v868_v8, 1 }
  0x9b   :  { %v129_v49 = vpop.permute.xlu0 %128  ;;  %v132_v50 = vpop.permute.xlu1 %131 }
  0x9c   :  { %v130_v51 = vsel %vm97_vm11, %v129_v49, %v792_v26  ;;  %v133_v52 = vsel %vm97_vm11, %v132_v50, %v807_v34  ;;  %v370_v49 = vsub.f32 %v792_v26, %v349_v19  ;;  %v348_v50 = vsel %vm343_vm0, %v335_v35, %v336_v41 }
  0x9d   :  { %164 = vrot.lane.b32.xlu1 %v127_v47, %s701_s23  ;;  %166 = vrot.lane.b32.xlu0 %v130_v51, %s701_s23  ;;  %v386_v47 = vmul.f32 %v369_v40, %v369_v40  ;;  %v337_v51 = vrot.slane %v797_v30, 7  ;;  %v392_v40 = vmul.f32 %v375_v29, %v375_v29  ;;  %v429_v19 = vrot.slane %v868_v8, 2 }
  0x9e   :  { %v703_v29 = vmov 0.0  }
  0x9f   :  { %v135_v53 = vpop.permute.xlu0 %134  ;;  %v138_v54 = vpop.permute.xlu1 %137  ;;  %63 = vst.msk [vmem:[#allocation2] sm:$0xff] %vm62_vm8, %v703_v29  ;;  %64 = vst.msk [vmem:[#allocation3] sm:$0xff] %vm62_vm8, %v703_v29 }
  0xa0   :  { %v136_v55 = vsel %vm97_vm11, %v135_v53, %v797_v30  ;;  %v139_v57 = vsel %vm97_vm11, %v138_v54, %v823_v43  ;;  %v410_v53 = vsel %vm62_vm8, %v386_v47, 0.0  ;;  %v966_v54 = vmul.f32 %v370_v49, %v370_v49  ;;  %65 = vst.msk [vmem:[#allocation4] sm:$0xff] %vm62_vm8, %v703_v29 }
  0xa1   :  { %168 = vrot.lane.b32.xlu1 %v133_v52, %s701_s23  ;;  %170 = vrot.lane.b32.xlu0 %v136_v55, %s701_s23  ;;  %v409_v52 = vadd.f32 %v408_v46, %v407_v44  ;;  %v371_v55 = vsub.f32 %v807_v34, %v348_v50  ;;  %v430_v46 = vrot.slane %v868_v8, 3  ;;  %v444_v47 = vsub.f32 %v737_v3, %v428_v38 }
  0xa2   :  { %v460_v50 = vsub.f32 %v452_v1, %v855_v62  ;;  %v433_v62 = vrot.slane %v868_v8, 6 }
  0xa3   :  { %v141_v58 = vpop.permute.xlu0 %140  ;;  %v144_v59 = vpop.permute.xlu1 %143 }
  0xa4   :  { %v142_v60 = vsel %vm97_vm11, %v141_v58, %v817_v42  ;;  %v145_v61 = vsel %vm97_vm11, %v144_v59, %v826_v45  ;;  %v338_v58 = vrot.slane %v823_v43, 7  ;;  %v411_v59 = vadd.f32 %v410_v53, %v409_v52 }
  0xa5   :  { %172 = vrot.lane.b32.xlu1 %v139_v57, %s701_s23  ;;  %174 = vrot.lane.b32.xlu0 %v142_v60, %s701_s23  ;;  %v347_v57 = vsel %vm343_vm0, %v336_v41, %v337_v51  ;;  %v412_v60 = vsel %vm62_vm8, %v966_v54, 0.0  ;;  %v459_v41 = vmul.f32 %v450_v31, %v450_v31  ;;  %v431_v53 = vrot.slane %v868_v8, 4 }
  0xa6   :  { %v372_v63 = vsub.f32 %v797_v30, %v347_v57  ;;  %v346_v0 = vsel %vm343_vm0, %v337_v51, %v338_v58  ;;  %v413_v10 = vadd.f32 %v412_v60, %v411_v59  ;;  %v345_v16 = vsel %vm343_vm0, %v338_v58, %v339_v7 }
  0xa7   :  { %v373_v15 = vsub.f32 %v823_v43, %v346_v0  ;;  %v374_v27 = vsub.f32 %v817_v42, %v345_v16  ;;  %v432_v59 = vrot.slane %v868_v8, 5  ;;  %v446_v60 = vsub.f32 %v766_v13, %v430_v46 }
  0xa8   :  { %v979_v14 = vmul.f32 %v372_v63, %v372_v63  ;;  %v453_v63 = vmul.f32 %v444_v47, %v444_v47  ;;  %v449_v21 = vsub.f32 %v797_v30, %v433_v62 }
  0xa9   :  { %176 = vrot.lane.b32.xlu1 %v145_v61, %s701_s23  ;;  %v388_v61 = vmul.f32 %v371_v55, %v371_v55  ;;  %v390_v24 = vmul.f32 %v373_v15, %v373_v15  ;;  %v997_v35 = vmul.f32 %v374_v27, %v374_v27  ;;  %v445_v55 = vsub.f32 %v759_v9, %v429_v19 }
  0xaa   :  { %v416_v23 = vsel %vm62_vm8, %v979_v14, 0.0  ;;  %v455_v15 = vmul.f32 %v446_v60, %v446_v60 }
  0xab   :  { %v414_v12 = vsel %vm62_vm8, %v388_v61, 0.0  ;;  %v418_v33 = vsel %vm62_vm8, %v390_v24, 0.0  ;;  %v420_v49 = vsel %vm62_vm8, %v997_v35, 0.0  ;;  %v447_v61 = vsub.f32 %v777_v18, %v431_v53 }
  0xac   :  { %v415_v22 = vadd.f32 %v414_v12, %v413_v10  ;;  %v454_v0 = vmul.f32 %v445_v55, %v445_v55  ;;  %v467_v10 = vsub.f32 %v459_v41, %v997_v35  ;;  %v448_v12 = vsub.f32 %v792_v26, %v432_v59  ;;  %v451_v59 = vld [vmem:[#allocation4] sm:$0xff] }
  0xae   :  { %v417_v32 = vadd.f32 %v416_v23, %v415_v22  ;;  %v456_v22 = vmul.f32 %v447_v61, %v447_v61  ;;  %v461_v23 = vsub.f32 %v453_v63, %v849_v56  ;;  %v462_v24 = vsub.f32 %v454_v0, %v864_v6 }
  0xaf   :  { %v457_v28 = vmul.f32 %v448_v12, %v448_v12  ;;  %v458_v56 = vmul.f32 %v449_v21, %v449_v21  ;;  %v463_v6 = vsub.f32 %v455_v15, %v939_v36 }
  0xb0   :  { %v419_v44 = vadd.f32 %v418_v33, %v417_v32  ;;  %v464_v31 = vsub.f32 %v456_v22, %v953_v39  ;;  %v476_v32 = vrot.slane %v461_v23, 7  ;;  %v422_v33 = vsel %vm62_vm8, %v392_v40, 0.0 }
  0xb1   :  { %v465_v35 = vsub.f32 %v457_v28, %v966_v54  ;;  %v479_v1 = vrot.slane %v462_v24, 6  ;;  %v466_v38 = vsub.f32 %v458_v56, %v979_v14  ;;  %v482_v41 = vrot.slane %v463_v6, 5 }
  0xb2   :  { %v421_v7 = vadd.f32 %v420_v49, %v419_v44  ;;  %v478_v19 = vsel %vm75_vm1, %v476_v32, %v460_v50  ;;  %v485_v44 = vrot.slane %v464_v31, 4  ;;  %v494_v54 = vrot.slane %v467_v10, 1 }
  0xb3   :  { %v481_v39 = vsel %vm78_vm2, %v479_v1, %v478_v19  ;;  %v488_v40 = vrot.slane %v465_v35, 3  ;;  %v491_v49 = vrot.slane %v466_v38, 2 }
  0xb4   :  { %v423_v47 = vadd.f32 %v422_v33, %v421_v7  ;;  %v484_v14 = vsel %vm81_vm3, %v482_v41, %v481_v39 }
  0xb5   :  { %v487_v50 = vsel %vm84_vm4, %v485_v44, %v484_v14 }
  0xb6   :  { %v490_v53 = vsel %vm87_vm5, %v488_v40, %v487_v50 }
  0xb7   :  { %v493_v60 = vsel %vm90_vm6, %v491_v49, %v490_v53 }
  0xb8   :  { %v496_v61 = vsel %vm93_vm7, %v494_v54, %v493_v60 }
  0xb9   :  { %v498_v63 = vadd.f32 %v496_v61, %v451_v59 }
  0xbb   :  { %499 = vst.msk [vmem:[#allocation4] sm:$0xff] %vm62_vm8, %v498_v63 }
  0xc2   :  { %v542_v6 = vld [vmem:[#allocation4] sm:$0xff] }
  0xc3   :  { %v543_v31 = vsel %vm62_vm8, %v542_v6, 0.0 }
  0xfb   :  { %v147_v48 = vpop.permute.xlu0 %146 }
  0xfc   :  { %v178_v37 = vsel %vm97_vm11, %v147_v48, %v735_v2 }
  0xfd   :  { %210 = vrot.lane.b32.xlu0 %v178_v37, %s702_s0 }
  0xff   :  { %v149_v51 = vpop.permute.xlu1 %148  ;;  %v151_v52 = vpop.permute.xlu0 %150 }
 0x100   :  { %v179_v57 = vsel %vm97_vm11, %v149_v51, %v745_v5  ;;  %v180_v58 = vsel %vm97_vm11, %v151_v52, %v737_v3 }
 0x101   :  { %212 = vrot.lane.b32.xlu1 %v179_v57, %s702_s0  ;;  %214 = vrot.lane.b32.xlu0 %v180_v58, %s702_s0  ;;  %v376_v58 = vld [vmem:[#allocation2] sm:$0xff] }
 0x102   :  { %v424_v62 = vadd.f32 %v423_v47, %v376_v58 }
 0x103   :  { %v153_v16 = vpop.permute.xlu1 %152  ;;  %v155_v20 = vpop.permute.xlu0 %154 }
 0x104   :  { %v181_v8 = vsel %vm97_vm11, %v153_v16, %v743_v4  ;;  %v182_v27 = vsel %vm97_vm11, %v155_v20, %v759_v9  ;;  %425 = vst.msk [vmem:[#allocation2] sm:$0xff] %vm62_vm8, %v424_v62 }
 0x105   :  { %216 = vrot.lane.b32.xlu1 %v181_v8, %s702_s0  ;;  %218 = vrot.lane.b32.xlu0 %v182_v27, %s702_s0 }
 0x107   :  { %v157_v48 = vpop.permute.xlu1 %156  ;;  %v159_v37 = vpop.permute.xlu0 %158 }
 0x108   :  { %v183_v46 = vsel %vm97_vm11, %v157_v48, %v762_v11  ;;  %v184_v36 = vsel %vm97_vm11, %v159_v37, %v766_v13 }
 0x109   :  { %220 = vrot.lane.b32.xlu1 %v183_v46, %s702_s0  ;;  %222 = vrot.lane.b32.xlu0 %v184_v36, %s702_s0 }
 0x10b   :  { %v161_v51 = vpop.permute.xlu1 %160  ;;  %v163_v52 = vpop.permute.xlu0 %162  ;;  %v531_v29 = vld [vmem:[#allocation2] sm:$0xff] }
 0x10c   :  { %v185_v55 = vsel %vm97_vm11, %v161_v51, %v775_v17  ;;  %v186_v57 = vsel %vm97_vm11, %v163_v52, %v777_v18  ;;  %v532_v56 = vsel %vm62_vm8, %v531_v29, 0.0 }
 0x10d   :  { %224 = vrot.lane.b32.xlu1 %v185_v55, %s702_s0  ;;  %226 = vrot.lane.b32.xlu0 %v186_v57, %s702_s0 }
 0x10f   :  { %v165_v0 = vpop.permute.xlu1 %164  ;;  %v167_v7 = vpop.permute.xlu0 %166 }
 0x110   :  { %v187_v10 = vsel %vm97_vm11, %v165_v0, %v790_v25  ;;  %v188_v12 = vsel %vm97_vm11, %v167_v7, %v792_v26 }
 0x111   :  { %228 = vrot.lane.b32.xlu1 %v187_v10, %s702_s0  ;;  %230 = vrot.lane.b32.xlu0 %v188_v12, %s702_s0 }
 0x113   :  { %v169_v15 = vpop.permute.xlu1 %168  ;;  %v171_v16 = vpop.permute.xlu0 %170 }
 0x114   :  { %v189_v20 = vsel %vm97_vm11, %v169_v15, %v807_v34  ;;  %v190_v21 = vsel %vm97_vm11, %v171_v16, %v797_v30 }
 0x115   :  { %232 = vrot.lane.b32.xlu1 %v189_v20, %s702_s0  ;;  %234 = vrot.lane.b32.xlu0 %v190_v21, %s702_s0 }
 0x117   :  { %v173_v22 = vpop.permute.xlu1 %172  ;;  %v175_v23 = vpop.permute.xlu0 %174 }
 0x118   :  { %v191_v24 = vsel %vm97_vm11, %v173_v22, %v823_v43  ;;  %v192_v8 = vsel %vm97_vm11, %v175_v23, %v817_v42 }
 0x119   :  { %236 = vrot.lane.b32.xlu1 %v191_v24, %s702_s0  ;;  %238 = vrot.lane.b32.xlu0 %v192_v8, %s702_s0 }
 0x11b   :  { %v177_v27 = vpop.permute.xlu1 %176 }
 0x11c   :  { %v193_v28 = vsel %vm97_vm11, %v177_v27, %v826_v45 }
 0x11d   :  { %240 = vrot.lane.b32.xlu1 %v193_v28, %s702_s0 }
 0x138   :  { %533 = vadd.xlane.f32.xlu0 %v532_v56 }
 0x141   :  { %544 = vadd.xlane.f32.xlu1 %v543_v31 }
 0x16f   :  { %v211_v32 = vpop.permute.xlu0 %210 }
 0x170   :  { %v258_v33 = vsub.f32 %v735_v2, %v211_v32 }
 0x172   :  { %v275_v48 = vmul.f32 %v258_v33, %v258_v33 }
 0x173   :  { %v213_v35 = vpop.permute.xlu1 %212  ;;  %v215_v1 = vpop.permute.xlu0 %214 }
 0x174   :  { %v259_v37 = vsub.f32 %v745_v5, %v213_v35  ;;  %v260_v38 = vsub.f32 %v737_v3, %v215_v1  ;;  %v292_v36 = vsel %vm62_vm8, %v275_v48, 0.0 }
 0x176   :  { %v276_v19 = vmul.f32 %v259_v37, %v259_v37  ;;  %v277_v41 = vmul.f32 %v260_v38, %v260_v38 }
 0x177   :  { %v217_v44 = vpop.permute.xlu1 %216  ;;  %v219_v46 = vpop.permute.xlu0 %218 }
 0x178   :  { %v293_v39 = vsel %vm62_vm8, %v276_v19, 0.0  ;;  %v261_v40 = vsub.f32 %v743_v4, %v217_v44  ;;  %v262_v47 = vsub.f32 %v759_v9, %v219_v46  ;;  %v295_v54 = vsel %vm62_vm8, %v277_v41, 0.0 }
 0x179   :  { %v294_v2 = vadd.f32 %v293_v39, %v292_v36 }
 0x17a   :  { %v278_v14 = vmul.f32 %v261_v40, %v261_v40  ;;  %v279_v49 = vmul.f32 %v262_v47, %v262_v47 }
 0x17b   :  { %v296_v5 = vadd.f32 %v295_v54, %v294_v2  ;;  %v221_v50 = vpop.permute.xlu1 %220  ;;  %v223_v3 = vpop.permute.xlu0 %222  ;;  %v274_v54 = vld [vmem:[#allocation3] sm:$0xff] }
 0x17c   :  { %v297_v51 = vsel %vm62_vm8, %v278_v14, 0.0  ;;  %v299_v52 = vsel %vm62_vm8, %v279_v49, 0.0  ;;  %v263_v53 = vsub.f32 %v762_v11, %v221_v50  ;;  %v264_v55 = vsub.f32 %v766_v13, %v223_v3 }
 0x17d   :  { %v298_v57 = vadd.f32 %v297_v51, %v296_v5 }
 0x17e   :  { %v280_v4 = vmul.f32 %v263_v53, %v263_v53  ;;  %v281_v58 = vmul.f32 %v264_v55, %v264_v55 }
 0x17f   :  { %v300_v9 = vadd.f32 %v299_v52, %v298_v57  ;;  %v225_v59 = vpop.permute.xlu1 %224  ;;  %v227_v60 = vpop.permute.xlu0 %226 }
 0x180   :  { %v301_v62 = vsel %vm62_vm8, %v280_v4, 0.0  ;;  %v303_v61 = vsel %vm62_vm8, %v281_v58, 0.0  ;;  %v265_v63 = vsub.f32 %v775_v17, %v225_v59  ;;  %v266_v0 = vsub.f32 %v777_v18, %v227_v60 }
 0x181   :  { %v302_v7 = vadd.f32 %v301_v62, %v300_v9 }
 0x182   :  { %v282_v10 = vmul.f32 %v265_v63, %v265_v63  ;;  %v283_v12 = vmul.f32 %v266_v0, %v266_v0 }
 0x183   :  { %v304_v11 = vadd.f32 %v303_v61, %v302_v7  ;;  %v229_v15 = vpop.permute.xlu1 %228  ;;  %v231_v13 = vpop.permute.xlu0 %230 }
 0x184   :  { %v305_v16 = vsel %vm62_vm8, %v282_v10, 0.0  ;;  %v307_v20 = vsel %vm62_vm8, %v283_v12, 0.0  ;;  %v267_v21 = vsub.f32 %v790_v25, %v229_v15  ;;  %v268_v22 = vsub.f32 %v792_v26, %v231_v13 }
 0x185   :  { %v306_v23 = vadd.f32 %v305_v16, %v304_v11 }
 0x186   :  { %v284_v24 = vmul.f32 %v267_v21, %v267_v21  ;;  %v285_v8 = vmul.f32 %v268_v22, %v268_v22 }
 0x187   :  { %v308_v17 = vadd.f32 %v307_v20, %v306_v23  ;;  %v233_v27 = vpop.permute.xlu1 %232  ;;  %v235_v18 = vpop.permute.xlu0 %234 }
 0x188   :  { %v309_v28 = vsel %vm62_vm8, %v284_v24, 0.0  ;;  %v311_v29 = vsel %vm62_vm8, %v285_v8, 0.0  ;;  %v269_v56 = vsub.f32 %v807_v34, %v233_v27  ;;  %v270_v6 = vsub.f32 %v797_v30, %v235_v18 }
 0x189   :  { %v310_v31 = vadd.f32 %v309_v28, %v308_v17 }
 0x18a   :  { %v286_v32 = vmul.f32 %v269_v56, %v269_v56  ;;  %v287_v33 = vmul.f32 %v270_v6, %v270_v6 }
 0x18b   :  { %v312_v25 = vadd.f32 %v311_v29, %v310_v31  ;;  %v237_v35 = vpop.permute.xlu1 %236  ;;  %v239_v26 = vpop.permute.xlu0 %238 }
 0x18c   :  { %v313_v1 = vsel %vm62_vm8, %v286_v32, 0.0  ;;  %v315_v48 = vsel %vm62_vm8, %v287_v33, 0.0  ;;  %v271_v37 = vsub.f32 %v823_v43, %v237_v35  ;;  %v272_v38 = vsub.f32 %v817_v42, %v239_v26 }
 0x18d   :  { %v314_v19 = vadd.f32 %v313_v1, %v312_v25 }
 0x18e   :  { %v288_v41 = vmul.f32 %v271_v37, %v271_v37  ;;  %v289_v44 = vmul.f32 %v272_v38, %v272_v38 }
 0x18f   :  { %v316_v34 = vadd.f32 %v315_v48, %v314_v19  ;;  %v241_v46 = vpop.permute.xlu1 %240 }
 0x190   :  { %v317_v30 = vsel %vm62_vm8, %v288_v41, 0.0  ;;  %v319_v36 = vsel %vm62_vm8, %v289_v44, 0.0  ;;  %v273_v39 = vsub.f32 %v826_v45, %v241_v46 }
 0x191   :  { %v318_v40 = vadd.f32 %v317_v30, %v316_v34 }
 0x192   :  { %v290_v47 = vmul.f32 %v273_v39, %v273_v39 }
 0x193   :  { %v320_v2 = vadd.f32 %v319_v36, %v318_v40 }
 0x194   :  { %v321_v14 = vsel %vm62_vm8, %v290_v47, 0.0 }
 0x195   :  { %v322_v43 = vadd.f32 %v321_v14, %v320_v2 }
 0x197   :  { %v323_v49 = vadd.f32 %v322_v43, %v274_v54 }
 0x199   :  { %324 = vst.msk [vmem:[#allocation3] sm:$0xff] %vm62_vm8, %v323_v49 }
 0x1a0   :  { %v530_v42 = vld [vmem:[#allocation3] sm:$0xff] }
 0x1a1   :  { %v557_v5 = vsel %vm62_vm8, %v530_v42, 0.0  ;;  %v568_v50 = vsel %vm567_vm12, %v530_v42, 0.0 }
 0x1a2   :  { %558 = vadd.xlane.f32.xlu0 %v557_v5 }
 0x1a6   :  { %569 = vadd.xlane.f32.xlu0 %v568_v50 }
 0x1c5   :  { %v534_v3 = vpop.xlane.xlu0 %533 }
 0x1c6   :  { %v535_v51 = vrot.slane %v534_v3, 4 }
 0x1c8   :  { %v536_v45 = vadd.f32 %v535_v51, %v534_v3 }
 0x1ca   :  { %v537_v52 = vrot.slane %v536_v45, 2 }
 0x1cc   :  { %v538_v53 = vadd.f32 %v537_v52, %v536_v45 }
 0x1ce   :  { %v545_v55 = vpop.xlane.xlu1 %544  ;;  %v539_v57 = vrot.slane %v538_v53, 1 }
 0x1cf   :  { %v546_v4 = vrot.slane %v545_v55, 4 }
 0x1d0   :  { %v540_v58 = vadd.f32 %v539_v57, %v538_v53 }
 0x1d1   :  { %v547_v9 = vadd.f32 %v546_v4, %v545_v55 }
 0x1d2   :  { %610 = vpush %v540_v58 }
 0x1d3   :  { %v548_v59 = vrot.slane %v547_v9, 2 }
 0x1d5   :  { %v549_v60 = vadd.f32 %v548_v59, %v547_v9 }
 0x1d7   :  { %v550_v62 = vrot.slane %v549_v60, 1 }
 0x1d9   :  { %v551_v61 = vadd.f32 %v550_v62, %v549_v60 }
 0x1db   :  { %612 = vpush %v551_v61 }
 0x203   :  { %s611_s24 = spop %610 }
 0x20c   :  { %s613_s27 = spop %612 }
 0x20d   :  { %s553_s28 = sadd.f32 %s613_s27, %s611_s24 }
 0x20f   :  { %v554_v63 = vstv %s553_s28 }
 0x210   :  { %556 = vst.msk [vmem:[#allocation9] sm:$0x1] %vm555_vm13, %v554_v63 }
 0x211   :  { %659 = shalt.err (!%p656_p12)
}
 0x212   :  { %s660_s5 = scalar_lea.hbm %s1145_s1, 16 }
 0x213   :  { %p661_p13 = scmp.ne.s32.totalorder %s1145_s1, %s660_s5  ;;  %p664_p0 = scmp.lt.u32.totalorder %s660_s5, %s1145_s1 }
 0x215   :  { %p666_p1 = pnand %p664_p0, %p661_p13 }
 0x217   :  { %669 = shalt.err (!%p666_p1)
}
 0x218   :  { %590 = dma.vmem_to_hbm [thread:$0]  %s588_s26, 16, %s1145_s1, [#allocation8]  }
 0x219   :  { %s705_s13 = smov [#allocation10]  }
 0x21a   :  { %s597_s14 = sshll.u32 %s705_s13, 4  ;;  %s598_s14 = int_to_ptr.vmem [resolvable:$true] %s597_s14 }
 0x21b   :  { %s670_s16 = scalar_lea.vmem %s598_s14, 16  ;;  %s674_s17 = scalar_lea.vmem %s598_s14, 32 }
 0x21c   :  { %p671_p2 = scmp.ne.s32.totalorder %s598_s14, %s670_s16  ;;  %p675_p3 = scmp.lt.s32.totalorder %s598_s14, %s598_s14 }
 0x21d   :  { %p676_p4 = scmp.lt.s32.totalorder %s674_s17, %s670_s16 }
 0x21f   :  { %p677_p5 = por %p676_p4, %p675_p3 }
 0x221   :  { %p678_p6 = pnand %p677_p5, %p671_p2 }
 0x22f   :  { %v559_v0 = vpop.xlane.xlu0 %558 }
 0x230   :  { %v560_v7 = vrot.slane %v559_v0, 4 }
 0x232   :  { %v561_v10 = vadd.f32 %v560_v7, %v559_v0 }
 0x233   :  { %v570_v12 = vpop.xlane.xlu0 %569 }
 0x234   :  { %v562_v11 = vrot.slane %v561_v10, 2  ;;  %v571_v15 = vrot.slane %v570_v12, 4 }
 0x236   :  { %v572_v13 = vadd.f32 %v571_v15, %v570_v12  ;;  %v563_v16 = vadd.f32 %v562_v11, %v561_v10 }
 0x238   :  { %v573_v20 = vrot.slane %v572_v13, 2  ;;  %v564_v21 = vrot.slane %v563_v16, 1 }
 0x23a   :  { %v574_v22 = vadd.f32 %v573_v20, %v572_v13  ;;  %v565_v23 = vadd.f32 %v564_v21, %v563_v16 }
 0x23c   :  { %614 = vpush %v565_v23  ;;  %v575_v24 = vrot.slane %v574_v22, 1 }
 0x23e   :  { %v576_v8 = vadd.f32 %v575_v24, %v574_v22 }
 0x240   :  { %616 = vpush %v576_v8 }
 0x26d   :  { %s615_s12 = spop %614 }
 0x271   :  { %s617_s1 = spop %616 }
 0x272   :  { %s578_s15 = ssub.f32 %s615_s12, %s617_s1 }
 0x274   :  { %v579_v17 = vstv %s578_s15 }
 0x275   :  { %580 = vst.msk [vmem:[#allocation10] sm:$0x1] %vm555_vm13, %v579_v17 }
 0x276   :  { %681 = shalt.err (!%p678_p6)
}
 0x277   :  { %s682_s20 = scalar_lea.hbm %s1146_s2, 16 }
 0x278   :  { %p683_p7 = scmp.ne.s32.totalorder %s1146_s2, %s682_s20  ;;  %p686_p8 = scmp.lt.u32.totalorder %s682_s20, %s1146_s2 }
 0x27a   :  { %p688_p9 = pnand %p686_p8, %p683_p7 }
 0x27c   :  { %691 = shalt.err (!%p688_p9)
}
 0x27d   :  { %600 = dma.vmem_to_hbm [thread:$0]  %s598_s14, 16, %s1146_s2, [#allocation11]  }
 0x27e   :  { %694 = dma.done.wait [#allocation8], 16  }
 0x27f   :  { %695 = vsyncadd [#allocation8], 4294967280 }
 0x280   :  { %696 = dma.done.wait [#allocation11], 16  }
 0x281   :  { %697 = vsyncadd [#allocation11], 4294967280 }
 0x282   :  { %607 = vsyncpa [#allocation7], 1 }
 0x283   :  { %608 = vsyncpa [#allocation8], 1 }
 0x284   :  { %609 = vsyncpa [#allocation11], 1 }

</bundles_post_ra>
